<compile_context>
chip_gen: v5e
topology: v5e:2x2
jax: 0.10.0
libtpu: 0.0.40
codegen_flags: <defaults>
</compile_context>

<pallas_src>
import functools

import jax
import jax.numpy as jnp
from jax import lax
from jax.experimental import pallas as pl
from jax.experimental.pallas import tpu as pltpu


def _topk_routing_kernel(q_ref, k_ref, w_ref, idx_ref, *, scale, topk):
    # q_ref, k_ref: (B, P2, C) VMEM tiles in their native dtype.
    # w_ref: (B, P2, topk) f32 routing weights; idx_ref: (B, P2, topk) i32 indices.
    q = q_ref[...]
    k = k_ref[...]

    # Batched matmul on the MXU with f32 accumulation; logits: (B, P2, P2).
    logits = jnp.einsum("bpc,bqc->bpq", q, k, preferred_element_type=jnp.float32)

    p2 = logits.shape[-1]
    col_iota = lax.broadcasted_iota(jnp.int32, logits.shape, 2)  # hoisted, loop-invariant

    # Iterative top-k (topk is small & static): take the row max, record its index
    # (smallest index on ties, matching lax.top_k), mask that position out, repeat.
    # NOTE: this is 2 XLU reductions per selected element; an *exact* single-reduction
    # argmax (value + index packed into one 32-bit comparable key) is not possible for
    # full-precision f32 logits, so we keep the exact form with everything hoisted.
    # NaN logits are assumed absent (NaN breaks the `cur == m` equality path).
    cur = logits
    vals, idxs = [], []
    for _ in range(topk):
        m = jnp.max(cur, axis=-1, keepdims=True)                                  # (B, P2, 1)
        is_max = cur == m
        idx = jnp.min(jnp.where(is_max, col_iota, p2), axis=-1, keepdims=True)    # (B, P2, 1)
        vals.append(m)
        idxs.append(idx)
        cur = jnp.where(col_iota == idx, -jnp.inf, cur)

    topk_vals = jnp.concatenate(vals, axis=-1)   # (B, P2, topk), sorted descending
    topk_idx = jnp.concatenate(idxs, axis=-1)    # (B, P2, topk) i32

    # softmax(scale * topk_vals): the row max is the (already sorted) first column,
    # and the positive scale commutes with both the selection above and the max here.
    e = jnp.exp((topk_vals - vals[0]) * scale)   # e[..., 0] == 1 exactly
    denom = jnp.sum(e, axis=-1, keepdims=True)
    w = e * pl.reciprocal(denom, approx=True)    # EUP slot, otherwise idle here

    w_ref[...] = w.astype(w_ref.dtype)
    idx_ref[...] = topk_idx


def _pick_block_n(n, p2, c, itemsize):
    """Windows per grid step, sized against a conservative VMEM budget.

    ~8 MiB of accounted working set keeps us under the default scoped-VMEM limit on
    every generation (v5e: 16 MiB, v6e/v7x: 32 MiB scoped; v7x only has 64 MiB
    physical). Per window: double-buffered q/k input tiles + live f32 logits copies.
    """
    per_win = 2 * 2 * p2 * c * itemsize + 4 * p2 * p2 * 4
    budget = 8 * 1024 * 1024
    b = max(1, budget // per_win)
    b = min(b, n)
    if n > 1:
        # keep >= 2 grid steps so both v7x TensorCores get work (harmless on v5e/v6e)
        b = min(b, pl.cdiv(n, 2))
    while n % b:  # avoid padded tail blocks
        b -= 1
    return b


def topk_routing(query, key, *, topk, qk_scale=None, block_n=None, vmem_limit_bytes=None):
    """query, key: (n, p^2, c) -> (r_weight f32, topk_index i32), each (n, p^2, topk)."""
    n, p2, c = query.shape
    assert key.shape == (n, p2, c)
    assert 0 < topk <= p2, "topk must be in (0, p^2]"
    scale = float(qk_scale) if qk_scale is not None else float(c) ** (-0.5)
    assert scale > 0.0, "positive qk scale required (top-k / scale commutation)"

    if block_n is None:
        block_n = _pick_block_n(n, p2, c, jnp.dtype(query.dtype).itemsize)
    assert n % block_n == 0

    kernel = functools.partial(_topk_routing_kernel, scale=scale, topk=topk)

    grid_spec = pltpu.PrefetchScalarGridSpec(
        num_scalar_prefetch=0,
        grid=(n // block_n,),
        in_specs=[
            pl.BlockSpec((block_n, p2, c), lambda b: (b, 0, 0)),
            pl.BlockSpec((block_n, p2, c), lambda b: (b, 0, 0)),
        ],
        out_specs=[
            pl.BlockSpec((block_n, p2, topk), lambda b: (b, 0, 0)),
            pl.BlockSpec((block_n, p2, topk), lambda b: (b, 0, 0)),
        ],
    )

    return pl.pallas_call(
        kernel,
        out_shape=(
            jax.ShapeDtypeStruct((n, p2, topk), jnp.float32),
            jax.ShapeDtypeStruct((n, p2, topk), jnp.int32),
        ),
        grid_spec=grid_spec,
        compiler_params=pltpu.CompilerParams(
            dimension_semantics=("parallel",),
            vmem_limit_bytes=vmem_limit_bytes,
        ),
    )(query, key)


def _reference(query, key, *, topk, qk_scale=None):
    # Mathematically identical to the PyTorch module (softmax(topk((q*scale) @ k^T)));
    # written with the positive scale applied after top-k so its matmul rounding
    # matches the kernel and the index comparison is robust.
    c = query.shape[-1]
    scale = qk_scale if qk_scale is not None else c ** (-0.5)
    logits = jnp.einsum("npc,nqc->npq", query, key, preferred_element_type=jnp.float32)
    vals, idx = lax.top_k(logits, topk)
    w = jax.nn.softmax(vals * scale, axis=-1)
    return w, idx


if __name__ == "__main__":
    # Small shapes consistent with the module: n=4 batch, n_win=4 -> p^2=16 regions,
    # qk_dim=32, topk=4.
    n, p2, c, topk = 4, 16, 32, 4
    key0 = jax.random.PRNGKey(0)
    kq, kk = jax.random.split(key0)
    q32 = jax.random.normal(kq, (n, p2, c), dtype=jnp.float32)
    k32 = jax.random.normal(kk, (n, p2, c), dtype=jnp.float32)

    # float32 path: full correctness check.
    r_weight, topk_index = topk_routing(q32, k32, topk=topk)
    jax.block_until_ready((r_weight, topk_index))

    ref_w, ref_idx = _reference(q32, k32, topk=topk)
    assert r_weight.shape == (n, p2, topk) and topk_index.shape == (n, p2, topk)
    assert jnp.array_equal(topk_index, ref_idx.astype(jnp.int32))
    # tolerance accounts for the approx (EUP) reciprocal in the in-kernel softmax
    assert jnp.allclose(r_weight, ref_w, atol=2e-3, rtol=2e-3)

    # bfloat16 path (native MXU dtype, no in-kernel f32 up-cast): smoke check.
    qb, kb = q32.astype(jnp.bfloat16), k32.astype(jnp.bfloat16)
    wb, idxb = topk_routing(qb, kb, topk=topk)
    jax.block_until_ready((wb, idxb))
    assert wb.shape == (n, p2, topk) and idxb.shape == (n, p2, topk)
    assert bool(jnp.all((idxb >= 0) & (idxb < p2)))
    assert bool(jnp.all(jnp.abs(jnp.sum(wb, axis=-1) - 1.0) < 5e-2))

    print("KERNEL_OK")
</pallas_src>

<mosaic_0001>
module attributes {stable_mosaic.version = 11 : i64} {
  func.func @_topk_routing_kernel(%arg0: i32, %arg1: memref<2x16x32xf32, #tpu.memory_space<vmem>>, %arg2: memref<2x16x32xf32, #tpu.memory_space<vmem>>, %arg3: memref<2x16x4xf32, #tpu.memory_space<vmem>>, %arg4: memref<2x16x4xi32, #tpu.memory_space<vmem>>) attributes {dimension_semantics = [#tpu.dimension_semantics<parallel>], iteration_bounds = array<i64: 2>, scalar_prefetch = 0 : i64, scratch_operands = 0 : i64, tpu.core_type = #tpu.core_type<tc>, window_params = [{transform_indices = @transform_0, window_bounds = array<i64: 2, 16, 32>}, {transform_indices = @transform_1, window_bounds = array<i64: 2, 16, 32>}, {transform_indices = @transform_2, window_bounds = array<i64: 2, 16, 4>}, {transform_indices = @transform_3, window_bounds = array<i64: 2, 16, 4>}]} {
    %c0 = arith.constant 0 : index
    %c0_0 = arith.constant 0 : index
    %c0_1 = arith.constant 0 : index
    %0 = vector.load %arg1[%c0, %c0_0, %c0_1] : memref<2x16x32xf32, #tpu.memory_space<vmem>>, vector<2x16x32xf32>
    %c0_2 = arith.constant 0 : index
    %c0_3 = arith.constant 0 : index
    %c0_4 = arith.constant 0 : index
    %1 = vector.load %arg2[%c0_2, %c0_3, %c0_4] : memref<2x16x32xf32, #tpu.memory_space<vmem>>, vector<2x16x32xf32>
    "tpu.trace_start"() <{level = 10 : i32, message = "bpc,bqc->bpq"}> : () -> ()
    %cst = arith.constant dense<0.000000e+00> : vector<2x16x16xf32>
    %2 = tpu.matmul %0, %1, %cst {dimension_numbers = #tpu.dot_dimension_numbers<[2], [2], [1], [1], [0, 0, 0, 1, 1, 1], [0], [0]>} : vector<2x16x32xf32>, vector<2x16x32xf32>, vector<2x16x16xf32> -> vector<2x16x16xf32>
    "tpu.trace_stop"() : () -> ()
    %3 = tpu.iota {dimensions = array<i32: 2>} : vector<2x16x16xi32>
    %cst_5 = arith.constant dense<0xFF800000> : vector<2x16xf32>
    %4 = vector.multi_reduction <maximumf>, %2, %cst_5 [2] : vector<2x16x16xf32> to vector<2x16xf32>
    %5 = vector.shape_cast %4 : vector<2x16xf32> to vector<2x16x1xf32>
    %6 = vector.broadcast %5 : vector<2x16x1xf32> to vector<2x16x16xf32>
    %7 = arith.cmpf oeq, %2, %6 : vector<2x16x16xf32>
    %c16_i32 = arith.constant 16 : i32
    %8 = vector.broadcast %c16_i32 : i32 to vector<2x16x16xi32>
    %9 = arith.select %7, %3, %8 : vector<2x16x16xi1>, vector<2x16x16xi32>
    %cst_6 = arith.constant dense<2147483647> : vector<2x16xi32>
    %10 = vector.multi_reduction <minsi>, %9, %cst_6 [2] : vector<2x16x16xi32> to vector<2x16xi32>
    %11 = vector.shape_cast %10 : vector<2x16xi32> to vector<2x16x1xi32>
    %12 = vector.broadcast %11 : vector<2x16x1xi32> to vector<2x16x16xi32>
    %13 = arith.cmpi eq, %3, %12 : vector<2x16x16xi32>
    %cst_7 = arith.constant 0xFF800000 : f32
    %14 = vector.broadcast %cst_7 : f32 to vector<2x16x16xf32>
    %15 = arith.select %13, %14, %2 : vector<2x16x16xi1>, vector<2x16x16xf32>
    %cst_8 = arith.constant dense<0xFF800000> : vector<2x16xf32>
    %16 = vector.multi_reduction <maximumf>, %15, %cst_8 [2] : vector<2x16x16xf32> to vector<2x16xf32>
    %17 = vector.shape_cast %16 : vector<2x16xf32> to vector<2x16x1xf32>
    %18 = vector.broadcast %17 : vector<2x16x1xf32> to vector<2x16x16xf32>
    %19 = arith.cmpf oeq, %15, %18 : vector<2x16x16xf32>
    %c16_i32_9 = arith.constant 16 : i32
    %20 = vector.broadcast %c16_i32_9 : i32 to vector<2x16x16xi32>
    %21 = arith.select %19, %3, %20 : vector<2x16x16xi1>, vector<2x16x16xi32>
    %cst_10 = arith.constant dense<2147483647> : vector<2x16xi32>
    %22 = vector.multi_reduction <minsi>, %21, %cst_10 [2] : vector<2x16x16xi32> to vector<2x16xi32>
    %23 = vector.shape_cast %22 : vector<2x16xi32> to vector<2x16x1xi32>
    %24 = vector.broadcast %23 : vector<2x16x1xi32> to vector<2x16x16xi32>
    %25 = arith.cmpi eq, %3, %24 : vector<2x16x16xi32>
    %cst_11 = arith.constant 0xFF800000 : f32
    %26 = vector.broadcast %cst_11 : f32 to vector<2x16x16xf32>
    %27 = arith.select %25, %26, %15 : vector<2x16x16xi1>, vector<2x16x16xf32>
    %cst_12 = arith.constant dense<0xFF800000> : vector<2x16xf32>
    %28 = vector.multi_reduction <maximumf>, %27, %cst_12 [2] : vector<2x16x16xf32> to vector<2x16xf32>
    %29 = vector.shape_cast %28 : vector<2x16xf32> to vector<2x16x1xf32>
    %30 = vector.broadcast %29 : vector<2x16x1xf32> to vector<2x16x16xf32>
    %31 = arith.cmpf oeq, %27, %30 : vector<2x16x16xf32>
    %c16_i32_13 = arith.constant 16 : i32
    %32 = vector.broadcast %c16_i32_13 : i32 to vector<2x16x16xi32>
    %33 = arith.select %31, %3, %32 : vector<2x16x16xi1>, vector<2x16x16xi32>
    %cst_14 = arith.constant dense<2147483647> : vector<2x16xi32>
    %34 = vector.multi_reduction <minsi>, %33, %cst_14 [2] : vector<2x16x16xi32> to vector<2x16xi32>
    %35 = vector.shape_cast %34 : vector<2x16xi32> to vector<2x16x1xi32>
    %36 = vector.broadcast %35 : vector<2x16x1xi32> to vector<2x16x16xi32>
    %37 = arith.cmpi eq, %3, %36 : vector<2x16x16xi32>
    %cst_15 = arith.constant 0xFF800000 : f32
    %38 = vector.broadcast %cst_15 : f32 to vector<2x16x16xf32>
    %39 = arith.select %37, %38, %27 : vector<2x16x16xi1>, vector<2x16x16xf32>
    %cst_16 = arith.constant dense<0xFF800000> : vector<2x16xf32>
    %40 = vector.multi_reduction <maximumf>, %39, %cst_16 [2] : vector<2x16x16xf32> to vector<2x16xf32>
    %41 = vector.shape_cast %40 : vector<2x16xf32> to vector<2x16x1xf32>
    %42 = vector.broadcast %41 : vector<2x16x1xf32> to vector<2x16x16xf32>
    %43 = arith.cmpf oeq, %39, %42 : vector<2x16x16xf32>
    %c16_i32_17 = arith.constant 16 : i32
    %44 = vector.broadcast %c16_i32_17 : i32 to vector<2x16x16xi32>
    %45 = arith.select %43, %3, %44 : vector<2x16x16xi1>, vector<2x16x16xi32>
    %cst_18 = arith.constant dense<2147483647> : vector<2x16xi32>
    %46 = vector.multi_reduction <minsi>, %45, %cst_18 [2] : vector<2x16x16xi32> to vector<2x16xi32>
    %47 = vector.shape_cast %46 : vector<2x16xi32> to vector<2x16x1xi32>
    %48 = tpu.concatenate %5, %17, %29, %41 in 2 : vector<2x16x1xf32>, vector<2x16x1xf32>, vector<2x16x1xf32>, vector<2x16x1xf32> -> vector<2x16x4xf32>
    %49 = tpu.concatenate %11, %23, %35, %47 in 2 : vector<2x16x1xi32>, vector<2x16x1xi32>, vector<2x16x1xi32>, vector<2x16x1xi32> -> vector<2x16x4xi32>
    %50 = vector.broadcast %5 : vector<2x16x1xf32> to vector<2x16x4xf32>
    %51 = arith.subf %48, %50 : vector<2x16x4xf32>
    %cst_19 = arith.constant 0.176776692 : f32
    %52 = vector.broadcast %cst_19 : f32 to vector<2x16x4xf32>
    %53 = arith.mulf %51, %52 : vector<2x16x4xf32>
    %54 = math.exp %53 : vector<2x16x4xf32>
    %cst_20 = arith.constant dense<0.000000e+00> : vector<2x16xf32>
    %55 = vector.multi_reduction <add>, %54, %cst_20 [2] : vector<2x16x4xf32> to vector<2x16xf32>
    %56 = vector.shape_cast %55 : vector<2x16xf32> to vector<2x16x1xf32>
    %57 = tpu.reciprocal %56 {approx = true} : vector<2x16x1xf32> -> vector<2x16x1xf32>
    %58 = vector.broadcast %57 : vector<2x16x1xf32> to vector<2x16x4xf32>
    %59 = arith.mulf %54, %58 : vector<2x16x4xf32>
    %c0_21 = arith.constant 0 : index
    %c0_22 = arith.constant 0 : index
    %c0_23 = arith.constant 0 : index
    %60 = vector.load %arg3[%c0_21, %c0_22, %c0_23] : memref<2x16x4xf32, #tpu.memory_space<vmem>>, vector<2x16x4xf32>
    tpu.vector_store %arg3[%c0_21, %c0_22, %c0_23], %59 {strides = array<i32>} : memref<2x16x4xf32, #tpu.memory_space<vmem>>, vector<2x16x4xf32>,
    %c0_24 = arith.constant 0 : index
    %c0_25 = arith.constant 0 : index
    %c0_26 = arith.constant 0 : index
    %61 = vector.load %arg4[%c0_24, %c0_25, %c0_26] : memref<2x16x4xi32, #tpu.memory_space<vmem>>, vector<2x16x4xi32>
    tpu.vector_store %arg4[%c0_24, %c0_25, %c0_26], %49 {strides = array<i32>} : memref<2x16x4xi32, #tpu.memory_space<vmem>>, vector<2x16x4xi32>,
    return
  }
  func.func @transform_0(%arg0: i32) -> (i32, i32, i32) {
    %c0_i32 = arith.constant 0 : i32
    %c0_i32_0 = arith.constant 0 : i32
    %c0_i32_1 = arith.constant 0 : i32
    return %arg0, %c0_i32, %c0_i32_0 : i32, i32, i32
  }
  func.func @transform_1(%arg0: i32) -> (i32, i32, i32) {
    %c0_i32 = arith.constant 0 : i32
    %c0_i32_0 = arith.constant 0 : i32
    %c0_i32_1 = arith.constant 0 : i32
    return %arg0, %c0_i32, %c0_i32_0 : i32, i32, i32
  }
  func.func @transform_2(%arg0: i32) -> (i32, i32, i32) {
    %c0_i32 = arith.constant 0 : i32
    %c0_i32_0 = arith.constant 0 : i32
    %c0_i32_1 = arith.constant 0 : i32
    return %arg0, %c0_i32, %c0_i32_0 : i32, i32, i32
  }
  func.func @transform_3(%arg0: i32) -> (i32, i32, i32) {
    %c0_i32 = arith.constant 0 : i32
    %c0_i32_0 = arith.constant 0 : i32
    %c0_i32_1 = arith.constant 0 : i32
    return %arg0, %c0_i32, %c0_i32_0 : i32, i32, i32
  }
}

</mosaic_0001>

<bundles_post_ra>
// kernel: tpu_custom_call.1
= control target key start
LH: loop header
LB: loop body
LE: loop exit
PB: predicated region body
PF: predicated region fallthrough
CT: control target
= control target key end

     0   :  { %9 = vsyncpa [#allocation3], 0  ;;  %s1511_s0 = inlined_call_operand.hbm [shape: f32[4,16,32], index: 0, kind: input, shape index: {}]   ;;  %s1512_s1 = inlined_call_operand.hbm [shape: f32[4,16,32], index: 1, kind: input, shape index: {}]   ;;  %s1513_s2 = inlined_call_operand.vmem [shape: f32[4,16,4], index: 2, kind: output, shape index: {0}]   ;;  %s1514_s3 = inlined_call_operand.vmem [shape: s32[4,16,4], index: 3, kind: output, shape index: {1}]  }
   0x1   :  { %11 = vsyncpa [#allocation3 + $0x1], 0 }
   0x2   :  { %12 = vsyncpa [#allocation5], 0 }
   0x3   :  { %14 = vsyncpa [#allocation5 + $0x1], 0  ;;  %s1109_s12 = smov 0   ;;  %s1111_s13 = smov 0  }
   0x4   :  { %s1113_s14 = smov 0   ;;  %s1115_s15 = smov 0  }
   0x5 LB: > { %s884_s16 = sadd.s32 4294967295, %s1085_s15   ;;  %s1129_s17 = sadd.s32 1, %s1085_s15   ;;  %s1085_s15 = sphi %s1115_s15, %s1522_s15   ;;  %s1081_s14 = sphi %s1113_s14, %s1521_s14   ;;  %s1077_s13 = sphi %s1111_s13, %s1520_s13   ;;  %s1073_s12 = sphi %s1109_s12, %s1519_s12  }
   0x6   : > { %s24_s18 = ssub.s32 %s1085_s15, %s1129_s17  ;;  %s27_s19 = sadd.s32 1, %s1081_s14 }
   0x7   : > { %p25_p0 = scmp.eq.s32.totalorder %s24_s18, 0  ;;  %p34_p1 = scmp.ne.s32.totalorder %s1081_s14, %s1077_s13 }
   0x8   : > { %p35_p2 = scmp.eq.s32.totalorder %s1085_s15, 0  ;;  %p40_p3 = scmp.ne.s32.totalorder %s1077_s13, %s1073_s12 }
   0x9   : > { %s1139_s20 = scalar_select %p25_p0, %s1081_s14, %s27_s19  }
   0xa   : > { %p1141_p4 = por %p35_p2, %p34_p1  ;;  %p41_p5 = scmp.eq.s32.totalorder %s884_s16, 0 }
   0xb   : > { %p936_p6 = scmp.lt.s32.totalorder %s1085_s15, 2  ;;  %s1153_s23 = sand.u32 1, %s1081_s14  }
   0xc   : > { %p1148_p7 = por %p41_p5, %p40_p3  ;;  %s888_s24 = sshll.u32 %s1153_s23, 5 }
   0xd   : > { %s916_s25 = sshll.u32 %s1085_s15, 5  ;;  %s146_s29 = scalar_lea.vmem [#allocation2], %s888_s24 }
   0xe   : > { %s152_s28 = scalar_lea.hbm %s1511_s0, %s916_s25  ;;  %s155_s30 = sshll.u32 %s146_s29, 4  ;;  %s156_s30 = int_to_ptr.vmem [resolvable:$true] %s155_s30 }
   0xf   : > { %s153_s4 = sshll.u32 %s152_s28, 4  ;;  %p1166_p8 = pnand %p936_p6, %p1141_p4  ;;  %s154_s4 = int_to_ptr.hbm [resolvable:$true] %s153_s4 }
  0x10   : > { %p896_p9 = scmp.ge.s32.totalorder %s1085_s15, 1  ;;  %s143_s6 = scalar_lea.sflag [#allocation3], %s1153_s23 }
  0x11   : > { %s987_s7 = sshra.s32 %s154_s4, 4  ;;  %p991_p11 = pneg %p1166_p8  ;;  %s988_s7 = int_to_ptr.hbm [resolvable:$true] %s987_s7 }
  0x12   : > { %s989_s8 = scalar_lea.hbm %s988_s7, 32  ;;  %s994_s11 = scalar_lea.hbm %s1511_s0, 64 }
  0x13   : > { %p990_p10 = scmp.ne.s32.totalorder %s988_s7, %s989_s8  ;;  %p995_p0 = scmp.lt.s32.totalorder %s988_s7, %s1511_s0 }
  0x14   : > { %p996_p1 = scmp.lt.s32.totalorder %s994_s11, %s989_s8 }
  0x15   : > { %p992_p12 = pnand %p991_p11, %p990_p10 }
  0x16   : > { %p997_p2 = por %p996_p1, %p995_p0 }
  0x17   : > { %p993_p13 = pneg %p992_p12 }
  0x19   : > { %p998_p3 = pnand %p997_p2, %p993_p13 }
  0x1b   : > { %1001 = shalt.err (!%p998_p3)
}
  0x1c   : > { %s1087_s19 = smov 128   ;;  %s1088_s21 = smov 8  }
  0x1d   : > { %932 = dma.hbm_to_vmem [thread:$0]  (!%p1166_p8), %s154_s4, 512, %s156_s30, %s143_s6, %s1087_s19, %s1087_s19, %s1088_s21  }
  0x1e   : > { %p186_p4 = scmp.lt.s32.totalorder %s1085_s15, 3  ;;  %s175_s28 = scalar_lea.hbm %s1512_s1, %s916_s25 }
  0x1f   : > { %s176_s7 = sshll.u32 %s175_s28, 4  ;;  %s169_s8 = scalar_lea.vmem [#allocation4], %s888_s24  ;;  %s177_s7 = int_to_ptr.hbm [resolvable:$true] %s176_s7 }
  0x20   : > { %p1193_p5 = pnand %p896_p9, %p186_p4  ;;  %s178_s9 = sshll.u32 %s169_s8, 4  ;;  %s179_s9 = int_to_ptr.vmem [resolvable:$true] %s178_s9 }
  0x21   : > { %s166_s10 = scalar_lea.sflag [#allocation5], %s1153_s23  ;;  %s1017_s11 = sshra.s32 %s177_s7, 4  ;;  %s1018_s11 = int_to_ptr.hbm [resolvable:$true] %s1017_s11 }
  0x22   : > { %s1019_s30 = scalar_lea.hbm %s1018_s11, 32  ;;  %s1024_s6 = scalar_lea.hbm %s1512_s1, 64 }
  0x23   : > { %p1020_p6 = scmp.ne.s32.totalorder %s1018_s11, %s1019_s30  ;;  %p1025_p9 = scmp.lt.s32.totalorder %s1018_s11, %s1512_s1 }
  0x24   : > { %p1026_p13 = scmp.lt.s32.totalorder %s1024_s6, %s1019_s30 }
  0x25   : > { %p1022_p10 = pnand %p1020_p6, %p991_p11 }
  0x26   : > { %p1027_p0 = por %p1026_p13, %p1025_p9 }
  0x27   : > { %p1023_p12 = pneg %p1022_p10 }
  0x29   : > { %p1028_p1 = pnand %p1027_p0, %p1023_p12 }
  0x2b   : > { %1031 = shalt.err (!%p1028_p1)
}
  0x2c   : > { %935 = dma.hbm_to_vmem [thread:$0]  (!%p1166_p8), %s177_s7, 512, %s179_s9, %s166_s10, %s1087_s19, %s1087_s19, %s1088_s21  }
  0x2d   : > { %190 = sbr.rel (%p1193_p5) target bundleno = 1652 (0x674), region = 28  ;;  %s192_s23 = sand.u32 (!%p1193_p5), 1, %s1077_s13  }
  0x2e   : > { %s897_s24 = sshll.u32 (!%p1193_p5), %s192_s23, 5  ;;  %s193_s26 = scalar_lea.sflag (!%p1193_p5), [#allocation3], %s192_s23 }
  0x2f   : > { %s196_s27 = scalar_lea.vmem (!%p1193_p5), [#allocation2], %s897_s24 }
  0x32   : > { %1064 = dma.done.wait (%p1148_p7), %s193_s26, 512  }
  0x33   : > { %1066 = vsyncadd (%p1148_p7), %s193_s26, 4294966784  ;;  %s203_s28 = scalar_lea.sflag [#allocation5], %s192_s23  ;;  %s206_s8 = scalar_lea.vmem [#allocation4], %s897_s24 }
  0x34   : > { %1068 = dma.done.wait (%p1148_p7), %s203_s28, 512  }
  0x35   : > { %1070 = vsyncadd (%p1148_p7), %s203_s28, 4294966784  ;;  %vm266_vm0 = vcmask 261120   ;;  %v263_v0 = vld [vmem:[%s206_s8 + $0x8] sm:$0xff]  ;;  %v265_v1 = vld [vmem:[%s206_s8 + $0x18] sm:$0xff]  ;;  %vm339_vm1 = vcmask 130048   ;;  %v337_v16 = vlaneseq  ;;  %s899_s22 = sshll.u32 %s884_s16, 1 }
  0x36   : > { %905 = vmatpush.xpose.msk.msra.mxu0 %vm266_vm0, %v263_v0  ;;  %909 = vmatpush.xpose.msk.msra.mxu1 %vm266_vm0, %v265_v1  ;;  %v262_v2 = vld [vmem:[%s206_s8] sm:$0xff]  ;;  %v264_v3 = vld [vmem:[%s206_s8 + $0x10] sm:$0xff]  ;;  %v259_v6 = vld [vmem:[%s196_s27 + $0x8] sm:$0xff]  ;;  %p245_p7 = scmp.lt.s32.totalorder %s899_s22, 3 }
  0x37   : > { %921 = vmatpush.xpose.msk.msra.mxu2 %vm266_vm0, %v263_v0  ;;  %923 = vmatpush.xpose.msk.msra.mxu3 %vm266_vm0, %v265_v1  ;;  %v258_v4 = vld [vmem:[%s196_s27] sm:$0xff]  ;;  %v260_v5 = vld [vmem:[%s196_s27 + $0x10] sm:$0xff]  ;;  %v261_v7 = vld [vmem:[%s196_s27 + $0x18] sm:$0xff]  ;;  %v1250_v17 = vand.u32 127, %v337_v16 }
  0x38   : > { %s1524_s22 = smov (!%p245_p7, %s899_s22), 3 }
  0x39   : > { %s919_s5 = sshll.u32 %s1524_s22, 4 }
  0x3a   : > { %906 = vmatpush.xpose.msk.msra.mxu0 %vm266_vm0, %v262_v2  ;;  %910 = vmatpush.xpose.msk.msra.mxu1 %vm266_vm0, %v264_v3  ;;  %s249_s15 = scalar_lea.vmem %s1513_s2, %s919_s5  ;;  %s256_s7 = scalar_lea.vmem %s1514_s3, %s919_s5 }
  0x3b   : > { %922 = vmatpush.xpose.msk.msra.mxu2 %vm266_vm0, %v262_v2  ;;  %924 = vmatpush.xpose.msk.msra.mxu3 %vm266_vm0, %v264_v3 }
  0x3d   : > { %907 = vmatmul.msk.f32.vlgmr.msra.gmra.mxu0 %vm266_vm0, %v258_v4  ;;  %911 = vmatmul.msk.f32.vlgmr.msra.gmra.mxu1 %vm266_vm0, %v260_v5 }
  0x3e   : > { %908 = vmatmul.msk.f32.vlgmr.msra.gmra.mxu2 %vm266_vm0, %v259_v6  ;;  %912 = vmatmul.msk.f32.vlgmr.msra.gmra.mxu3 %vm266_vm0, %v261_v7 }
  0xba   : > { %v1234_v8 = vpop.f32.mrf.mxu0  ;;  %v1236_v9 = vpop.f32.mrf.mxu1 }
  0xbb   : > { %v346_v10 = vsel %vm339_vm1, %v1236_v9, -inf  ;;  %v340_v11 = vsel %vm339_vm1, %v1234_v8, -inf }
  0xbc   : > { %347 = vmax.xlane.f32.xlu1 %v346_v10  ;;  %341 = vmax.xlane.f32.xlu0 %v340_v11 }
  0xc1   : > { %v1242_v12 = vpop.f32.mrf.mxu2  ;;  %v1244_v13 = vpop.f32.mrf.mxu3 }
  0xc2   : > { %v349_v14 = vsel %vm339_vm1, %v1244_v13, -inf  ;;  %v343_v15 = vsel %vm339_vm1, %v1242_v12, -inf }
  0xc4   : > { %350 = vmax.xlane.f32.xlu1 %v349_v14  ;;  %344 = vmax.xlane.f32.xlu0 %v343_v15 }
 0x12f   : > { %v1252_v18 = vpop.xlane.xlu1 %347  ;;  %v1254_v19 = vpop.xlane.xlu0 %341 }
 0x130   : > { %vm354_vm2 = vcmp.eq.f32.partialorder %v1236_v9, %v1252_v18  ;;  %vm352_vm3 = vcmp.eq.f32.partialorder %v1234_v8, %v1254_v19 }
 0x131   : > { %v358_v20 = vsel %vm354_vm2, %v1250_v17, 16  ;;  %v356_v21 = vsel %vm352_vm3, %v1250_v17, 16 }
 0x132   : > { %v390_v22 = vsel %vm339_vm1, %v358_v20, 2147483647  ;;  %v360_v23 = vsel %vm339_vm1, %v356_v21, 2147483647 }
 0x133   : > { %v392_v24 = vshra.s32 %v390_v22, 16  ;;  %v362_v25 = vshra.s32 %v360_v23, 16  ;;  %v361_v38 = vand.u32 65535, %v360_v23  ;;  %v391_v39 = vand.u32 65535, %v390_v22 }
 0x135   : > { %v394_v26 = vcvt.s32.f32 %v392_v24  ;;  %v364_v27 = vcvt.s32.f32 %v362_v25  ;;  %v363_v42 = vcvt.s32.f32 %v361_v38  ;;  %v393_v43 = vcvt.s32.f32 %v391_v39 }
 0x137   : > { %v1264_v28 = vpop.xlane.xlu1 %350  ;;  %395 = vmin.xlane.f32.xlu0 %v394_v26  ;;  %365 = vmin.xlane.f32.xlu2 %v364_v27  ;;  %v1266_v29 = vpop.xlane.xlu0 %344 }
 0x138   : > { %vm355_vm4 = vcmp.eq.f32.partialorder %v1244_v13, %v1264_v28  ;;  %vm353_vm5 = vcmp.eq.f32.partialorder %v1242_v12, %v1266_v29 }
 0x139   : > { %v359_v30 = vsel %vm355_vm4, %v1250_v17, 16  ;;  %v357_v31 = vsel %vm353_vm5, %v1250_v17, 16 }
 0x13a   : > { %v405_v32 = vsel %vm339_vm1, %v359_v30, 2147483647  ;;  %v375_v33 = vsel %vm339_vm1, %v357_v31, 2147483647 }
 0x13b   : > { %v407_v34 = vshra.s32 %v405_v32, 16  ;;  %v377_v35 = vshra.s32 %v375_v33, 16  ;;  %v406_v46 = vand.u32 65535, %v405_v32  ;;  %v376_v47 = vand.u32 65535, %v375_v33 }
 0x13d   : > { %v409_v36 = vcvt.s32.f32 %v407_v34  ;;  %v379_v37 = vcvt.s32.f32 %v377_v35  ;;  %v408_v50 = vcvt.s32.f32 %v406_v46  ;;  %v378_v51 = vcvt.s32.f32 %v376_v47 }
 0x13f   : > { %410 = vmin.xlane.f32.xlu1 %v409_v36  ;;  %380 = vmin.xlane.f32.xlu2 %v379_v37 }
 0x1aa   : > { %v366_v40 = vpop.xlane.xlu2 %365  ;;  %v396_v41 = vpop.xlane.xlu0 %395 }
 0x1ab   : > { %vm367_vm6 = vcmp.eq.f32.partialorder %v364_v27, %v366_v40  ;;  %vm397_vm7 = vcmp.eq.f32.partialorder %v394_v26, %v396_v41  ;;  %v372_v54 = vcvt.f32.s32 %v366_v40  ;;  %v402_v55 = vcvt.f32.s32 %v396_v41 }
 0x1ac   : > { %v368_v44 = vsel %vm367_vm6, %v363_v42, inf  ;;  %v398_v45 = vsel %vm397_vm7, %v393_v43, inf }
 0x1ad   : > { %369 = vmin.xlane.f32.xlu2 %v368_v44  ;;  %399 = vmin.xlane.f32.xlu1 %v398_v45  ;;  %v373_v58 = vshll.u32 %v372_v54, 16  ;;  %v403_v59 = vshll.u32 %v402_v55, 16 }
 0x1b2   : > { %v411_v48 = vpop.xlane.xlu1 %410  ;;  %v381_v49 = vpop.xlane.xlu2 %380 }
 0x1b3   : > { %vm412_vm8 = vcmp.eq.f32.partialorder %v409_v36, %v411_v48  ;;  %vm382_vm9 = vcmp.eq.f32.partialorder %v379_v37, %v381_v49  ;;  %v417_v0 = vcvt.f32.s32 %v411_v48  ;;  %v387_v1 = vcvt.f32.s32 %v381_v49 }
 0x1b4   : > { %v413_v52 = vsel %vm412_vm8, %v408_v50, inf  ;;  %v383_v53 = vsel %vm382_vm9, %v378_v51, inf }
 0x1b5   : > { %414 = vmin.xlane.f32.xlu2 %v413_v52  ;;  %384 = vmin.xlane.f32.xlu0 %v383_v53  ;;  %v418_v10 = vshll.u32 %v417_v0, 16  ;;  %v388_v11 = vshll.u32 %v387_v1, 16 }
 0x220   : > { %v370_v56 = vpop.xlane.xlu2 %369  ;;  %v400_v57 = vpop.xlane.xlu1 %399 }
 0x221   : > { %v371_v60 = vcvt.f32.s32 %v370_v56  ;;  %v401_v61 = vcvt.f32.s32 %v400_v57 }
 0x223   : > { %v1276_v62 = vadd.s32 %v373_v58, %v371_v60  ;;  %v1278_v63 = vadd.s32 %v403_v59, %v401_v61 }
 0x225   : > { %vm420_vm10 = vcmp.eq.s32.totalorder %v1250_v17, %v1276_v62  ;;  %vm422_vm11 = vcmp.eq.s32.totalorder %v1250_v17, %v1278_v63 }
 0x226   : > { %v1285_v2 = vsel %vm420_vm10, -inf, %v1234_v8  ;;  %v1288_v3 = vsel %vm422_vm11, -inf, %v1236_v9  ;;  %vm684_vm11 = vcmask 7168  }
 0x227   : > { %v428_v4 = vsel %vm339_vm1, %v1285_v2, -inf  ;;  %v434_v5 = vsel %vm339_vm1, %v1288_v3, -inf }
 0x228   : > { %v415_v6 = vpop.xlane.xlu2 %414  ;;  %429 = vmax.xlane.f32.xlu0 %v428_v4  ;;  %435 = vmax.xlane.f32.xlu2 %v434_v5  ;;  %v385_v7 = vpop.xlane.xlu0 %384 }
 0x229   : > { %v416_v14 = vcvt.f32.s32 %v415_v6  ;;  %v386_v15 = vcvt.f32.s32 %v385_v7 }
 0x22b   : > { %v1294_v16 = vadd.s32 %v418_v10, %v416_v14  ;;  %v1296_v8 = vadd.s32 %v388_v11, %v386_v15 }
 0x22d   : > { %vm423_vm12 = vcmp.eq.s32.totalorder %v1250_v17, %v1294_v16  ;;  %vm421_vm13 = vcmp.eq.s32.totalorder %v1250_v17, %v1296_v8 }
 0x22e   : > { %v1303_v9 = vsel %vm423_vm12, -inf, %v1244_v13  ;;  %v1306_v20 = vsel %vm421_vm13, -inf, %v1242_v12  ;;  %vm689_vm12 = vcmask 15360  }
 0x22f   : > { %v437_v21 = vsel %vm339_vm1, %v1303_v9, -inf  ;;  %v431_v22 = vsel %vm339_vm1, %v1306_v20, -inf }
 0x230   : > { %438 = vmax.xlane.f32.xlu0 %v437_v21  ;;  %432 = vmax.xlane.f32.xlu1 %v431_v22 }
 0x29b   : > { %v1312_v23 = vpop.xlane.xlu2 %435  ;;  %v1314_v24 = vpop.xlane.xlu0 %429 }
 0x29c   : > { %vm442_vm14 = vcmp.eq.f32.partialorder %v1288_v3, %v1312_v23  ;;  %vm440_vm15 = vcmp.eq.f32.partialorder %v1285_v2, %v1314_v24 }
 0x29d   : > { %v446_v12 = vsel %vm442_vm14, %v1250_v17, 16  ;;  %v444_v13 = vsel %vm440_vm15, %v1250_v17, 16 }
 0x29e   : > { %v478_v25 = vsel %vm339_vm1, %v446_v12, 2147483647  ;;  %v448_v26 = vsel %vm339_vm1, %v444_v13, 2147483647 }
 0x29f   : > { %v480_v27 = vshra.s32 %v478_v25, 16  ;;  %v450_v30 = vshra.s32 %v448_v26, 16  ;;  %v449_v43 = vand.u32 65535, %v448_v26  ;;  %v479_v44 = vand.u32 65535, %v478_v25 }
 0x2a1   : > { %v482_v31 = vcvt.s32.f32 %v480_v27  ;;  %v452_v32 = vcvt.s32.f32 %v450_v30  ;;  %v451_v47 = vcvt.s32.f32 %v449_v43  ;;  %v481_v48 = vcvt.s32.f32 %v479_v44 }
 0x2a3   : > { %483 = vmin.xlane.f32.xlu0 %v482_v31  ;;  %v1324_v33 = vpop.xlane.xlu1 %432  ;;  %453 = vmin.xlane.f32.xlu1 %v452_v32  ;;  %v1326_v34 = vpop.xlane.xlu0 %438 }
 0x2a4   : > { %vm441_vm0 = vcmp.eq.f32.partialorder %v1306_v20, %v1324_v33  ;;  %vm443_vm2 = vcmp.eq.f32.partialorder %v1303_v9, %v1326_v34 }
 0x2a5   : > { %v445_v35 = vsel %vm441_vm0, %v1250_v17, 16  ;;  %v447_v36 = vsel %vm443_vm2, %v1250_v17, 16 }
 0x2a6   : > { %v463_v37 = vsel %vm339_vm1, %v445_v35, 2147483647  ;;  %v493_v38 = vsel %vm339_vm1, %v447_v36, 2147483647 }
 0x2a7   : > { %v465_v39 = vshra.s32 %v463_v37, 16  ;;  %v495_v40 = vshra.s32 %v493_v38, 16  ;;  %v464_v51 = vand.u32 65535, %v463_v37  ;;  %v494_v52 = vand.u32 65535, %v493_v38 }
 0x2a8   : > { %v685_v38 = vsel %vm684_vm11, %v1254_v19, %v1314_v24 }
 0x2a9   : > { %v467_v41 = vcvt.s32.f32 %v465_v39  ;;  %v497_v42 = vcvt.s32.f32 %v495_v40  ;;  %v466_v55 = vcvt.s32.f32 %v464_v51  ;;  %v496_v56 = vcvt.s32.f32 %v494_v52 }
 0x2ab   : > { %468 = vmin.xlane.f32.xlu2 %v467_v41  ;;  %498 = vmin.xlane.f32.xlu1 %v497_v42 }
 0x316   : > { %v454_v45 = vpop.xlane.xlu1 %453  ;;  %v484_v46 = vpop.xlane.xlu0 %483 }
 0x317   : > { %vm455_vm3 = vcmp.eq.f32.partialorder %v452_v32, %v454_v45  ;;  %vm485_vm4 = vcmp.eq.f32.partialorder %v482_v31, %v484_v46  ;;  %v460_v59 = vcvt.f32.s32 %v454_v45  ;;  %v490_v60 = vcvt.f32.s32 %v484_v46 }
 0x318   : > { %v456_v49 = vsel %vm455_vm3, %v451_v47, inf  ;;  %v486_v50 = vsel %vm485_vm4, %v481_v48, inf }
 0x319   : > { %457 = vmin.xlane.f32.xlu2 %v456_v49  ;;  %487 = vmin.xlane.f32.xlu1 %v486_v50  ;;  %v461_v1 = vshll.u32 %v460_v59, 16  ;;  %v491_v4 = vshll.u32 %v490_v60, 16 }
 0x31e   : > { %v469_v53 = vpop.xlane.xlu2 %468  ;;  %v499_v54 = vpop.xlane.xlu1 %498 }
 0x31f   : > { %vm470_vm5 = vcmp.eq.f32.partialorder %v467_v41, %v469_v53  ;;  %vm500_vm6 = vcmp.eq.f32.partialorder %v497_v42, %v499_v54  ;;  %v475_v11 = vcvt.f32.s32 %v469_v53  ;;  %v505_v14 = vcvt.f32.s32 %v499_v54 }
 0x320   : > { %v471_v57 = vsel %vm470_vm5, %v466_v55, inf  ;;  %v501_v58 = vsel %vm500_vm6, %v496_v56, inf }
 0x321   : > { %472 = vmin.xlane.f32.xlu0 %v471_v57  ;;  %502 = vmin.xlane.f32.xlu2 %v501_v58  ;;  %v476_v26 = vshll.u32 %v475_v11, 16  ;;  %v506_v27 = vshll.u32 %v505_v14, 16 }
 0x38c   : > { %v458_v61 = vpop.xlane.xlu2 %457  ;;  %v488_v0 = vpop.xlane.xlu1 %487 }
 0x38d   : > { %v459_v5 = vcvt.f32.s32 %v458_v61  ;;  %v489_v6 = vcvt.f32.s32 %v488_v0 }
 0x38f   : > { %v1336_v7 = vadd.s32 %v461_v1, %v459_v5  ;;  %v1338_v10 = vadd.s32 %v491_v4, %v489_v6 }
 0x391   : > { %vm508_vm7 = vcmp.eq.s32.totalorder %v1250_v17, %v1336_v7  ;;  %vm510_vm8 = vcmp.eq.s32.totalorder %v1250_v17, %v1338_v10 }
 0x392   : > { %v1345_v15 = vsel %vm508_vm7, -inf, %v1285_v2  ;;  %v1348_v21 = vsel %vm510_vm8, -inf, %v1288_v3 }
 0x393   : > { %v516_v22 = vsel %vm339_vm1, %v1345_v15, -inf  ;;  %v522_v12 = vsel %vm339_vm1, %v1348_v21, -inf }
 0x394   : > { %517 = vmax.xlane.f32.xlu0 %v516_v22  ;;  %v503_v13 = vpop.xlane.xlu2 %502  ;;  %523 = vmax.xlane.f32.xlu2 %v522_v12  ;;  %v473_v25 = vpop.xlane.xlu0 %472 }
 0x395   : > { %v504_v30 = vcvt.f32.s32 %v503_v13  ;;  %v474_v31 = vcvt.f32.s32 %v473_v25 }
 0x397   : > { %v1354_v32 = vadd.s32 %v506_v27, %v504_v30  ;;  %v1356_v2 = vadd.s32 %v476_v26, %v474_v31 }
 0x399   : > { %vm511_vm9 = vcmp.eq.s32.totalorder %v1250_v17, %v1354_v32  ;;  %vm509_vm10 = vcmp.eq.s32.totalorder %v1250_v17, %v1356_v2 }
 0x39a   : > { %v1363_v3 = vsel %vm511_vm9, -inf, %v1303_v9  ;;  %v1366_v35 = vsel %vm509_vm10, -inf, %v1306_v20  ;;  %vm694_vm10 = vcmask 23552  }
 0x39b   : > { %v525_v36 = vsel %vm339_vm1, %v1363_v3, -inf  ;;  %v519_v37 = vsel %vm339_vm1, %v1366_v35, -inf }
 0x39c   : > { %526 = vmax.xlane.f32.xlu0 %v525_v36  ;;  %520 = vmax.xlane.f32.xlu1 %v519_v37 }
 0x407   : > { %v1375_v39 = vpop.xlane.xlu2 %523  ;;  %v518_v9 = vpop.xlane.xlu0 %517 }
 0x408   : > { %vm530_vm13 = vcmp.eq.f32.partialorder %v1348_v21, %v1375_v39  ;;  %vm528_vm14 = vcmp.eq.f32.partialorder %v1345_v15, %v518_v9  ;;  %v1381_v20 = vsel %vm689_vm12, %v685_v38, %v518_v9 }
 0x409   : > { %v534_v40 = vsel %vm530_vm13, %v1250_v17, 16  ;;  %v532_v41 = vsel %vm528_vm14, %v1250_v17, 16 }
 0x40a   : > { %v566_v42 = vsel %vm339_vm1, %v534_v40, 2147483647  ;;  %v536_v43 = vsel %vm339_vm1, %v532_v41, 2147483647 }
 0x40b   : > { %v568_v24 = vshra.s32 %v566_v42, 16  ;;  %v538_v44 = vshra.s32 %v536_v43, 16  ;;  %v537_v57 = vand.u32 65535, %v536_v43  ;;  %v567_v58 = vand.u32 65535, %v566_v42 }
 0x40c   : > { %v699_v42 = vsel %vm684_vm11, %v1276_v62, %v1336_v7  ;;  %v701_v43 = vsel %vm684_vm11, %v1278_v63, %v1338_v10 }
 0x40d   : > { %v570_v45 = vcvt.s32.f32 %v568_v24  ;;  %v540_v46 = vcvt.s32.f32 %v538_v44  ;;  %v539_v61 = vcvt.s32.f32 %v537_v57  ;;  %v569_v0 = vcvt.s32.f32 %v567_v58 }
 0x40f   : > { %571 = vmin.xlane.f32.xlu0 %v570_v45  ;;  %v1387_v47 = vpop.xlane.xlu1 %520  ;;  %541 = vmin.xlane.f32.xlu1 %v540_v46  ;;  %v1389_v48 = vpop.xlane.xlu0 %526 }
 0x410   : > { %vm529_vm15 = vcmp.eq.f32.partialorder %v1366_v35, %v1387_v47  ;;  %vm531_vm0 = vcmp.eq.f32.partialorder %v1363_v3, %v1389_v48 }
 0x411   : > { %v533_v49 = vsel %vm529_vm15, %v1250_v17, 16  ;;  %v535_v50 = vsel %vm531_vm0, %v1250_v17, 16 }
 0x412   : > { %v551_v51 = vsel %vm339_vm1, %v533_v49, 2147483647  ;;  %v581_v52 = vsel %vm339_vm1, %v535_v50, 2147483647 }
 0x413   : > { %v553_v53 = vshra.s32 %v551_v51, 16  ;;  %v583_v54 = vshra.s32 %v581_v52, 16  ;;  %v552_v5 = vand.u32 65535, %v551_v51  ;;  %v582_v6 = vand.u32 65535, %v581_v52 }
 0x415   : > { %v555_v55 = vcvt.s32.f32 %v553_v53  ;;  %v585_v56 = vcvt.s32.f32 %v583_v54  ;;  %v554_v22 = vcvt.s32.f32 %v552_v5  ;;  %v584_v12 = vcvt.s32.f32 %v582_v6 }
 0x417   : > { %556 = vmin.xlane.f32.xlu2 %v555_v55  ;;  %586 = vmin.xlane.f32.xlu1 %v585_v56 }
 0x482   : > { %v542_v59 = vpop.xlane.xlu1 %541  ;;  %v572_v60 = vpop.xlane.xlu0 %571 }
 0x483   : > { %vm543_vm2 = vcmp.eq.f32.partialorder %v540_v46, %v542_v59  ;;  %vm573_vm3 = vcmp.eq.f32.partialorder %v570_v45, %v572_v60  ;;  %v548_v26 = vcvt.f32.s32 %v542_v59  ;;  %v578_v27 = vcvt.f32.s32 %v572_v60 }
 0x484   : > { %v544_v1 = vsel %vm543_vm2, %v539_v61, inf  ;;  %v574_v4 = vsel %vm573_vm3, %v569_v0, inf }
 0x485   : > { %545 = vmin.xlane.f32.xlu2 %v544_v1  ;;  %575 = vmin.xlane.f32.xlu1 %v574_v4  ;;  %v549_v36 = vshll.u32 %v548_v26, 16  ;;  %v579_v37 = vshll.u32 %v578_v27, 16 }
 0x48a   : > { %v557_v11 = vpop.xlane.xlu2 %556  ;;  %v587_v14 = vpop.xlane.xlu1 %586 }
 0x48b   : > { %vm558_vm4 = vcmp.eq.f32.partialorder %v555_v55, %v557_v11  ;;  %vm588_vm5 = vcmp.eq.f32.partialorder %v585_v56, %v587_v14  ;;  %v563_v24 = vcvt.f32.s32 %v557_v11  ;;  %v593_v44 = vcvt.f32.s32 %v587_v14 }
 0x48c   : > { %v559_v13 = vsel %vm558_vm4, %v554_v22, inf  ;;  %v589_v25 = vsel %vm588_vm5, %v584_v12, inf }
 0x48d   : > { %560 = vmin.xlane.f32.xlu0 %v559_v13  ;;  %590 = vmin.xlane.f32.xlu2 %v589_v25  ;;  %v564_v51 = vshll.u32 %v563_v24, 16  ;;  %v594_v52 = vshll.u32 %v593_v44, 16  ;;  %v688_v25 = vsel %vm684_vm11, %v1264_v28, %v1326_v34 }
 0x48e   : > { %v693_v26 = vsel %vm689_vm12, %v688_v25, %v1389_v48 }
 0x4f8   : > { %v546_v30 = vpop.xlane.xlu2 %545  ;;  %v576_v31 = vpop.xlane.xlu1 %575 }
 0x4f9   : > { %v547_v38 = vcvt.f32.s32 %v546_v30  ;;  %v577_v9 = vcvt.f32.s32 %v576_v31 }
 0x4fb   : > { %v550_v40 = vadd.s32 %v549_v36, %v547_v38  ;;  %v580_v41 = vadd.s32 %v579_v37, %v577_v9 }
 0x4fd   : > { %v1406_v45 = vsel %vm689_vm12, %v699_v42, %v550_v40  ;;  %v1409_v46 = vsel %vm689_vm12, %v701_v43, %v580_v41  ;;  %vm596_vm6 = vcmp.eq.s32.totalorder %v1250_v17, %v550_v40  ;;  %vm598_vm7 = vcmp.eq.s32.totalorder %v1250_v17, %v580_v41 }
 0x4fe   : > { %v600_v49 = vsel %vm596_vm6, -inf, %v1345_v15  ;;  %v602_v62 = vsel %vm598_vm7, -inf, %v1348_v21  ;;  %v702_v15 = vsel %vm684_vm11, %v1294_v16, %v1354_v32  ;;  %v700_v21 = vsel %vm684_vm11, %v1296_v8, %v1356_v2 }
 0x4ff   : > { %v604_v7 = vsel %vm339_vm1, %v600_v49, -inf  ;;  %v610_v63 = vsel %vm339_vm1, %v602_v62, -inf  ;;  %v687_v8 = vsel %vm684_vm11, %v1252_v18, %v1312_v23 }
 0x500   : > { %605 = vmax.xlane.f32.xlu0 %v604_v7  ;;  %v591_v10 = vpop.xlane.xlu2 %590  ;;  %611 = vmax.xlane.f32.xlu2 %v610_v63  ;;  %v561_v50 = vpop.xlane.xlu0 %560  ;;  %v692_v2 = vsel %vm689_vm12, %v687_v8, %v1375_v39 }
 0x501   : > { %v592_v53 = vcvt.f32.s32 %v591_v10  ;;  %v562_v54 = vcvt.f32.s32 %v561_v50 }
 0x503   : > { %v595_v55 = vadd.s32 %v594_v52, %v592_v53  ;;  %v565_v56 = vadd.s32 %v564_v51, %v562_v54 }
 0x505   : > { %v1424_v57 = vsel %vm689_vm12, %v702_v15, %v595_v55  ;;  %v1427_v58 = vsel %vm689_vm12, %v700_v21, %v565_v56  ;;  %vm599_vm8 = vcmp.eq.s32.totalorder %v1250_v17, %v595_v55  ;;  %vm597_vm9 = vcmp.eq.s32.totalorder %v1250_v17, %v565_v56 }
 0x506   : > { %v603_v59 = vsel %vm599_vm8, -inf, %v1363_v3  ;;  %v601_v60 = vsel %vm597_vm9, -inf, %v1366_v35 }
 0x507   : > { %v613_v16 = vsel %vm339_vm1, %v603_v59, -inf  ;;  %v607_v32 = vsel %vm339_vm1, %v601_v60, -inf }
 0x508   : > { %614 = vmax.xlane.f32.xlu0 %v613_v16  ;;  %608 = vmax.xlane.f32.xlu1 %v607_v32 }
 0x573   : > { %v612_v61 = vpop.xlane.xlu2 %611  ;;  %v606_v0 = vpop.xlane.xlu0 %605 }
 0x574   : > { %vm618_vm13 = vcmp.eq.f32.partialorder %v602_v62, %v612_v61  ;;  %v697_v3 = vsel %vm694_vm10, %v692_v2, %v612_v61  ;;  %vm616_vm14 = vcmp.eq.f32.partialorder %v600_v49, %v606_v0  ;;  %v695_v35 = vsel %vm694_vm10, %v1381_v20, %v606_v0 }
 0x575   : > { %v622_v1 = vsel %vm618_vm13, %v1250_v17, 16  ;;  %v620_v4 = vsel %vm616_vm14, %v1250_v17, 16  ;;  %v711_v5 = vsub.f32 %v695_v35, %v1254_v19  ;;  %v713_v23 = vsub.f32 %v697_v3, %v1252_v18 }
 0x576   : > { %v654_v6 = vsel %vm339_vm1, %v622_v1, 2147483647  ;;  %v624_v39 = vsel %vm339_vm1, %v620_v4, 2147483647  ;;  %v686_v20 = vsel %vm684_vm11, %v1266_v29, %v1324_v33  ;;  %vm727_vm11 = vcmask 31744  }
 0x577   : > { %v656_v11 = vshra.s32 %v654_v6, 16  ;;  %v626_v14 = vshra.s32 %v624_v39, 16  ;;  %v715_v22 = vmul.f32 0.17677669, %v711_v5  ;;  %v717_v19 = vmul.f32 0.17677669, %v713_v23 }
 0x578   : > { %v691_v18 = vsel %vm689_vm12, %v686_v20, %v1387_v47  ;;  %v625_v53 = vand.u32 65535, %v624_v39  ;;  %v655_v54 = vand.u32 65535, %v654_v6 }
 0x579   : > { %v658_v12 = vcvt.s32.f32 %v656_v11  ;;  %v628_v13 = vcvt.s32.f32 %v626_v14  ;;  %v719_v31 = vmul.f32 1.442695, %v715_v22  ;;  %v723_v38 = vmul.f32 1.442695, %v717_v19 }
 0x57a   : > { %v627_v15 = vcvt.s32.f32 %v625_v53  ;;  %v657_v21 = vcvt.s32.f32 %v655_v54 }
 0x57b   : > { %659 = vmin.xlane.f32.xlu0 %v658_v12  ;;  %v609_v27 = vpop.xlane.xlu1 %608  ;;  %629 = vmin.xlane.f32.xlu1 %v628_v13  ;;  %v615_v30 = vpop.xlane.xlu0 %614  ;;  %971 = vpow2.f32 %v719_v31 }
 0x57c   : > { %vm617_vm15 = vcmp.eq.f32.partialorder %v601_v60, %v609_v27  ;;  %v696_v36 = vsel %vm694_vm10, %v691_v18, %v609_v27  ;;  %vm619_vm0 = vcmp.eq.f32.partialorder %v603_v59, %v615_v30  ;;  %v698_v47 = vsel %vm694_vm10, %v693_v26, %v615_v30 }
 0x57d   : > { %v621_v33 = vsel %vm617_vm15, %v1250_v17, 16  ;;  %v712_v34 = vsub.f32 %v696_v36, %v1266_v29  ;;  %v623_v37 = vsel %vm619_vm0, %v1250_v17, 16  ;;  %v714_v48 = vsub.f32 %v698_v47, %v1264_v28 }
 0x57e   : > { %v639_v9 = vsel %vm339_vm1, %v621_v33, 2147483647  ;;  %v669_v40 = vsel %vm339_vm1, %v623_v37, 2147483647  ;;  %973 = vpow2.f32 %v723_v38 }
 0x57f   : > { %v716_v41 = vmul.f32 0.17677669, %v712_v34  ;;  %v641_v42 = vshra.s32 %v639_v9, 16  ;;  %v671_v43 = vshra.s32 %v669_v40, 16  ;;  %v718_v44 = vmul.f32 0.17677669, %v714_v48 }
 0x580   : > { %v640_v16 = vand.u32 65535, %v639_v9  ;;  %v670_v32 = vand.u32 65535, %v669_v40 }
 0x581   : > { %v721_v24 = vmul.f32 1.442695, %v716_v41  ;;  %v643_v49 = vcvt.s32.f32 %v641_v42  ;;  %v673_v62 = vcvt.s32.f32 %v671_v43  ;;  %v725_v17 = vmul.f32 1.442695, %v718_v44  ;;  %v972_v29 = vpop.eup %971 }
 0x582   : > { %v728_v10 = vsel %vm727_vm11, %v972_v29, 0.0  ;;  %v642_v61 = vcvt.s32.f32 %v640_v16  ;;  %v672_v0 = vcvt.s32.f32 %v670_v32 }
 0x583   : > { %975 = vpow2.f32 %v721_v24  ;;  %644 = vmin.xlane.f32.xlu2 %v643_v49  ;;  %674 = vmin.xlane.f32.xlu1 %v673_v62 }
 0x584   : > { %v974_v28 = vpop.eup %973  ;;  %977 = vpow2.f32 %v725_v17 }
 0x585   : > { %v734_v50 = vsel %vm727_vm11, %v974_v28, 0.0 }
 0x589   : > { %v976_v7 = vpop.eup %975 }
 0x58a   : > { %v731_v63 = vsel %vm727_vm11, %v976_v7, 0.0  ;;  %v978_v51 = vpop.eup %977 }
 0x58b   : > { %732 = vadd.xlane.f32.xlu0 %v731_v63  ;;  %729 = vadd.xlane.f32.xlu2 %v728_v10  ;;  %v737_v52 = vsel %vm727_vm11, %v978_v51, 0.0 }
 0x58c   : > { %735 = vadd.xlane.f32.xlu1 %v734_v50 }
 0x593   : > { %738 = vadd.xlane.f32.xlu2 %v737_v52 }
 0x5ee   : > { %v630_v55 = vpop.xlane.xlu1 %629  ;;  %v660_v56 = vpop.xlane.xlu0 %659 }
 0x5ef   : > { %vm631_vm1 = vcmp.eq.f32.partialorder %v628_v13, %v630_v55  ;;  %vm661_vm12 = vcmp.eq.f32.partialorder %v658_v12, %v660_v56  ;;  %v636_v25 = vcvt.f32.s32 %v630_v55  ;;  %v666_v19 = vcvt.f32.s32 %v660_v56 }
 0x5f0   : > { %v632_v59 = vsel %vm631_vm1, %v627_v15, inf  ;;  %v662_v60 = vsel %vm661_vm12, %v657_v21, inf }
 0x5f1   : > { %633 = vmin.xlane.f32.xlu0 %v632_v59  ;;  %663 = vmin.xlane.f32.xlu2 %v662_v60  ;;  %v637_v27 = vshll.u32 %v636_v25, 16  ;;  %v667_v30 = vshll.u32 %v666_v19, 16 }
 0x5f6   : > { %v645_v8 = vpop.xlane.xlu2 %644  ;;  %v675_v2 = vpop.xlane.xlu1 %674 }
 0x5f7   : > { %vm646_vm2 = vcmp.eq.f32.partialorder %v643_v49, %v645_v8  ;;  %vm676_vm3 = vcmp.eq.f32.partialorder %v673_v62, %v675_v2  ;;  %v651_v37 = vcvt.f32.s32 %v645_v8  ;;  %v681_v47 = vcvt.f32.s32 %v675_v2 }
 0x5f8   : > { %v647_v3 = vsel %vm646_vm2, %v642_v61, inf  ;;  %v677_v35 = vsel %vm676_vm3, %v672_v0, inf }
 0x5f9   : > { %648 = vmin.xlane.f32.xlu1 %v647_v3  ;;  %678 = vmin.xlane.f32.xlu0 %v677_v35  ;;  %v652_v41 = vshll.u32 %v651_v37, 16  ;;  %v682_v42 = vshll.u32 %v681_v47, 16 }
 0x5fe   : > { %v730_v1 = vpop.xlane.xlu2 %729  ;;  %v733_v4 = vpop.xlane.xlu0 %732 }
 0x5ff   : > { %979 = vrcp.f32 %v730_v1  ;;  %v736_v5 = vpop.xlane.xlu1 %735 }
 0x600   : > { %981 = vrcp.f32 %v736_v5 }
 0x601   : > { %983 = vrcp.f32 %v733_v4 }
 0x605   : > { %v980_v23 = vpop.eup %979 }
 0x606   : > { %v982_v6 = vpop.eup %981  ;;  %v744_v39 = vmul.f32 %v980_v23, %v972_v29  ;;  %v739_v11 = vpop.xlane.xlu2 %738 }
 0x607   : > { %v984_v14 = vpop.eup %983  ;;  %v746_v22 = vmul.f32 %v982_v6, %v974_v28  ;;  %985 = vrcp.f32 %v739_v11 }
 0x608   : > { %v745_v12 = vmul.f32 %v984_v14, %v976_v7  ;;  %748 = vst.msk [vmem:[%s249_s15] sm:$0xff] %vm727_vm11, %v744_v39 }
 0x609   : > { %750 = vst.msk [vmem:[%s249_s15 + $0x10] sm:$0xff] %vm727_vm11, %v746_v22 }
 0x60a   : > { %749 = vst.msk [vmem:[%s249_s15 + $0x8] sm:$0xff] %vm727_vm11, %v745_v12 }
 0x60d   : > { %v986_v13 = vpop.eup %985 }
 0x60e   : > { %v747_v20 = vmul.f32 %v986_v13, %v978_v51 }
 0x610   : > { %751 = vst.msk [vmem:[%s249_s15 + $0x18] sm:$0xff] %vm727_vm11, %v747_v20 }
 0x664   : > { %v664_v18 = vpop.xlane.xlu2 %663  ;;  %v634_v26 = vpop.xlane.xlu0 %633 }
 0x665   : > { %v665_v31 = vcvt.f32.s32 %v664_v18  ;;  %v635_v36 = vcvt.f32.s32 %v634_v26 }
 0x667   : > { %v668_v33 = vadd.s32 %v667_v30, %v665_v31  ;;  %v638_v34 = vadd.s32 %v637_v27, %v635_v36 }
 0x669   : > { %v709_v38 = vsel %vm694_vm10, %v1409_v46, %v668_v33  ;;  %v707_v48 = vsel %vm694_vm10, %v1406_v45, %v638_v34 }
 0x66a   : > { %752 = vst.msk [vmem:[%s256_s7] sm:$0xff] %vm727_vm11, %v707_v48 }
 0x66b   : > { %754 = vst.msk [vmem:[%s256_s7 + $0x10] sm:$0xff] %vm727_vm11, %v709_v38 }
 0x66c   : > { %v649_v9 = vpop.xlane.xlu1 %648  ;;  %v679_v40 = vpop.xlane.xlu0 %678 }
 0x66d   : > { %v650_v43 = vcvt.f32.s32 %v649_v9  ;;  %v680_v24 = vcvt.f32.s32 %v679_v40 }
 0x66f   : > { %v653_v44 = vadd.s32 %v652_v41, %v650_v43  ;;  %v683_v49 = vadd.s32 %v682_v42, %v680_v24 }
 0x671   : > { %v708_v62 = vsel %vm694_vm10, %v1427_v58, %v653_v44  ;;  %v710_v46 = vsel %vm694_vm10, %v1424_v57, %v683_v49 }
 0x672   : > { %753 = vst.msk [vmem:[%s256_s7 + $0x8] sm:$0xff] %vm727_vm11, %v708_v62 }
 0x673   : > { %755 = vst.msk [vmem:[%s256_s7 + $0x18] sm:$0xff] %vm727_vm11, %v710_v46 }
 0x674 PF: > { %p17_p8 = scmp.ge.s32.totalorder %s1129_s17, 4   ;;  %s1519_s12 = smov %s1077_s13 }
 0x675   : > { %s1520_s13 = smov %s1081_s14  ;;  %s1521_s14 = smov %s1139_s20 }
 0x676   : > { %s1522_s15 = smov %s1129_s17  ;;  %19 = sbr.rel (!%p17_p8) target bundleno = 5 (0x5), region = 93 }
 0x67b   :  { %799 = vsyncpa [#allocation3], 1 }
 0x67c   :  { %801 = vsyncpa [#allocation3 + $0x1], 1 }
 0x67d   :  { %802 = vsyncpa [#allocation5], 1 }
 0x67e   :  { %804 = vsyncpa [#allocation5 + $0x1], 1 }

</bundles_post_ra>
